<compile_context>
chip_gen: v6e
topology: v6e:2x2x1
jax: 0.10.0
libtpu: 0.0.40
codegen_flags: <defaults>
</compile_context>

<pallas_src>
import functools

import jax
import jax.numpy as jnp
from jax import lax
from jax.experimental import pallas as pl
from jax.experimental.pallas import tpu as pltpu

BN_EPS = 1e-5
_LANE = 128


def _round_up(x, m):
    return (x + m - 1) // m * m


def _resident_spec(block_shape, index_map):
    """BlockSpec whose block index never changes -> single-buffer it."""
    try:
        return pl.BlockSpec(block_shape, index_map, pipeline_mode=pl.Buffered(1))
    except Exception:  # older jax without pipeline_mode / Buffered
        return pl.BlockSpec(block_shape, index_map)


def _pick_tiling(Kp, Cp):
    """Largest M tile whose pass-1 working set fits in ~half of VMEM."""
    try:
        cap = int(pltpu.get_tpu_info().vmem_capacity_bytes)
    except Exception:
        cap = 64 << 20                       # v7x per-core VMEM (most restrictive)
    budget = cap // 2                        # headroom: compiler scratch, sems, temps
    tile_m = 128
    for tm in (2048, 1024, 512, 256, 128):
        need = (2 * tm * Kp * 2              # patches, bf16, double-buffered
                + Kp * Cp * 2                # resident weight, bf16, single-buffered
                + 2 * tm * Cp * 2            # y output, bf16, double-buffered
                + 3 * tm * Cp * 4)           # f32 intermediates (y, y*y) in-kernel
        if need <= budget:
            tile_m = tm
            break
    vmem_limit = min(cap - (4 << 20), budget + (16 << 20))
    return tile_m, vmem_limit


def _conv_stats_kernel(p_ref, w_ref, y_ref, stats_ref):
    """Pass 1: y = patches @ w (bf16 operands, f32 accumulation on the MXU).
    Store y (bf16) and accumulate per-channel sum / sum-of-squares across the
    M tiles of this split.

    p_ref    : (TILE_M, Kp)  bf16
    w_ref    : (Kp, Cp)      bf16   resident, single-buffered
    y_ref    : (TILE_M, Cp)  bf16   lane-dense output (Cp multiple of 128)
    stats_ref: (1, 2, Cp)    f32    row 0 = sum(y), row 1 = sum(y*y); resident
    """
    y = jnp.dot(p_ref[...], w_ref[...], preferred_element_type=jnp.float32)
    y_ref[...] = y.astype(y_ref.dtype)

    # Per-channel reductions as 1xM @ MxC matmuls -> ride the MXU slot instead
    # of an axis-0 XLU reduce.  (Zero-padded rows contribute 0.)
    ones = jnp.ones((1, y.shape[0]), jnp.float32)
    tile_sum = jnp.dot(ones, y, preferred_element_type=jnp.float32)
    tile_sq = jnp.dot(ones, y * y, preferred_element_type=jnp.float32)

    @pl.when(pl.program_id(1) == 0)
    def _():
        stats_ref[...] = jnp.zeros_like(stats_ref)

    stats_ref[...] += jnp.concatenate([tile_sum, tile_sq], axis=0)[None]


def _bn_relu_kernel(y_ref, scale_ref, bias_ref, o_ref):
    """Pass 2: in-place per-channel affine + ReLU over the stored y.

    y_ref    : (TILE_M, Cp) bf16   (aliased with o_ref's HBM buffer)
    scale_ref: (1, Cp)      f32    gamma / sqrt(var + eps)
    bias_ref : (1, Cp)      f32    beta - mean * scale
    o_ref    : (TILE_M, Cp) bf16
    """
    y = y_ref[...].astype(jnp.float32)
    o_ref[...] = jnp.maximum(y * scale_ref[...] + bias_ref[...],
                             0.0).astype(o_ref.dtype)


@functools.partial(jax.jit, static_argnames=("stride", "padding"))
def conv_norm_act(x, weight, gamma, beta, *, stride=1, padding=0):
    """x: (N, C_in, H, W) NCHW.  weight: (C_out, C_in, KH, KW).  Returns NCHW.

    groups=1, dilation=1, bias=False (module defaults). BatchNorm uses
    training-mode batch statistics (fresh nn.BatchNorm2d).
    """
    N, C_in, H, W = x.shape
    C_out, _, KH, KW = weight.shape

    # padding_mode='reflect' (only active when padding > 0; default 0).
    if padding > 0:
        x = jnp.pad(
            x, ((0, 0), (0, 0), (padding, padding), (padding, padding)),
            mode="reflect")
        H = H + 2 * padding
        W = W + 2 * padding

    H_out = (H - KH) // stride + 1
    W_out = (W - KW) // stride + 1
    M = N * H_out * W_out
    K = KH * KW * C_in

    # MXU / lane-friendly padded dims.  Cp rounds to 256-multiples past 128 to
    # fill the 256-wide MXU columns on v6e/v7x.
    Kp = _round_up(K, _LANE)
    Cp = _round_up(C_out, _LANE) if C_out <= _LANE else _round_up(C_out, 2 * _LANE)

    tile_m, vmem_limit = _pick_tiling(Kp, Cp)
    tile_m = min(tile_m, _round_up(M, 16))
    n_tiles = -(-M // tile_m)
    # Split the stats accumulation across TensorCores (v7x has two): one
    # partial-stats row per split, summed in the tiny JAX fold below.
    num_splits = 2 if n_tiles >= 2 else 1
    n_tiles = _round_up(n_tiles, num_splits)
    tiles_per_split = n_tiles // num_splits
    Mp = n_tiles * tile_m

    # --- glue: im2col (XLA, bf16) ---------------------------------------------
    # TODO(synk): form patches in-kernel from an NHWC input tile + KH/KW halo
    # DMA and accumulate per-tap matmuls, to avoid materializing the
    # KH*KW-expanded patches buffer in HBM.
    x_nhwc = jnp.transpose(x, (0, 2, 3, 1)).astype(jnp.bfloat16)  # (N, H, W, Cin)
    taps = []
    for kh in range(KH):
        for kw in range(KW):
            taps.append(x_nhwc[:, kh:kh + stride * H_out:stride,
                               kw:kw + stride * W_out:stride, :])
    # last-dim order: (kh, kw, ci)
    patches = jnp.concatenate(taps, axis=-1).reshape(M, K)
    patches_p = jnp.pad(patches, ((0, Mp - M), (0, Kp - K)))          # bf16

    # weight[co, ci, kh, kw] -> w2d[(kh*KW + kw)*Cin + ci, co]
    w2d = jnp.transpose(weight, (2, 3, 1, 0)).reshape(K, C_out).astype(jnp.bfloat16)
    w_p = jnp.pad(w2d, ((0, Kp - K), (0, Cp - C_out)))

    p_spec = pl.BlockSpec((tile_m, Kp), lambda c, m: (c * tiles_per_split + m, 0))
    w_spec = _resident_spec((Kp, Cp), lambda c, m: (0, 0))

    # --- pass 1: y = patches @ w, plus per-channel sum / sum-of-squares -------
    # TODO(synk): add a K reduction grid axis (pl.when-init f32 accumulator)
    # for very large C_in so (tile_m, Kp) and (Kp, Cp) need not hold all of K.
    y_flat, stats = pl.pallas_call(
        _conv_stats_kernel,
        out_shape=(jax.ShapeDtypeStruct((Mp, Cp), jnp.bfloat16),
                   jax.ShapeDtypeStruct((num_splits, 2, Cp), jnp.float32)),
        grid_spec=pltpu.PrefetchScalarGridSpec(
            num_scalar_prefetch=0,
            grid=(num_splits, tiles_per_split),
            in_specs=[p_spec, w_spec],
            out_specs=(pl.BlockSpec((tile_m, Cp),
                                    lambda c, m: (c * tiles_per_split + m, 0)),
                       pl.BlockSpec((1, 2, Cp), lambda c, m: (c, 0, 0)))),
        compiler_params=pltpu.CompilerParams(
            dimension_semantics=("parallel", "arbitrary"),
            vmem_limit_bytes=vmem_limit),
    )(patches_p, w_p)

    # --- fold train-mode BatchNorm into a per-channel affine (tiny, f32) ------
    # NOTE: E[y^2] - mean^2 in f32; clamp at 0 guards cancellation when
    # |mean| >> std (conv of zero-mean activations keeps this benign).
    stats = jnp.sum(stats, axis=0)                                    # (2, Cp)
    mean = stats[0] / float(M)
    var = jnp.maximum(stats[1] / float(M) - mean * mean, 0.0)
    inv_std = lax.rsqrt(var + BN_EPS)
    gamma_p = jnp.pad(gamma.astype(jnp.float32), (0, Cp - C_out))
    beta_p = jnp.pad(beta.astype(jnp.float32), (0, Cp - C_out))
    scale = (gamma_p * inv_std).reshape(1, Cp)
    bias = (beta_p - mean * gamma_p * inv_std).reshape(1, Cp)

    # --- pass 2: affine + ReLU in place on the stored y (parallel over M) -----
    out = pl.pallas_call(
        _bn_relu_kernel,
        out_shape=jax.ShapeDtypeStruct((Mp, Cp), jnp.bfloat16),
        grid_spec=pltpu.PrefetchScalarGridSpec(
            num_scalar_prefetch=0,
            grid=(n_tiles,),
            in_specs=[pl.BlockSpec((tile_m, Cp), lambda m: (m, 0)),
                      _resident_spec((1, Cp), lambda m: (0, 0)),
                      _resident_spec((1, Cp), lambda m: (0, 0))],
            out_specs=pl.BlockSpec((tile_m, Cp), lambda m: (m, 0))),
        compiler_params=pltpu.CompilerParams(
            dimension_semantics=("parallel",),
            vmem_limit_bytes=vmem_limit),
        input_output_aliases={0: 0},        # read-modify-write sweep on y
    )(y_flat, scale, bias)

    # --- glue: strip padding, back to NCHW in the input dtype -----------------
    # TODO(synk): keep NHWC end-to-end for the consumer to save this transpose.
    out = out[:M, :C_out].astype(x.dtype).reshape(N, H_out, W_out, C_out)
    return jnp.transpose(out, (0, 3, 1, 2))                           # (N, C_out, Ho, Wo)


def _reference(x, weight, gamma, beta, *, stride=1, padding=0):
    """Pure-JAX f32 reference matching PyTorch ConvNormAct forward (train-mode BN)."""
    if padding > 0:
        x = jnp.pad(
            x, ((0, 0), (0, 0), (padding, padding), (padding, padding)),
            mode="reflect")
    y = lax.conv_general_dilated(
        x.astype(jnp.float32), weight.astype(jnp.float32),
        window_strides=(stride, stride), padding="VALID",
        dimension_numbers=("NCHW", "OIHW", "NCHW"))
    mean = jnp.mean(y, axis=(0, 2, 3), keepdims=True)
    var = jnp.mean((y - mean) ** 2, axis=(0, 2, 3), keepdims=True)
    y = (y - mean) / jnp.sqrt(var + BN_EPS)
    y = y * gamma.reshape(1, -1, 1, 1) + beta.reshape(1, -1, 1, 1)
    return jnp.maximum(y, 0.0)


if __name__ == "__main__":
    N, C_in, H, W = 2, 4, 16, 16
    C_out, KH, KW = 8, 3, 3

    key = jax.random.PRNGKey(0)
    kx, kw = jax.random.split(key)
    x = jax.random.normal(kx, (N, C_in, H, W), dtype=jnp.float32)
    # Conv2d weight, kaiming-uniform-ish deterministic init; bias=False.
    fan_in = C_in * KH * KW
    bound = 1.0 / (fan_in ** 0.5)
    weight = jax.random.uniform(kw, (C_out, C_in, KH, KW),
                                minval=-bound, maxval=bound, dtype=jnp.float32)
    # Fresh BatchNorm2d params.
    gamma = jnp.ones((C_out,), jnp.float32)
    beta = jnp.zeros((C_out,), jnp.float32)

    out = conv_norm_act(x, weight, gamma, beta, stride=1, padding=0)
    out = jax.block_until_ready(out)

    ref = _reference(x, weight, gamma, beta, stride=1, padding=0)
    assert out.shape == (N, C_out, H - KH + 1, W - KW + 1), out.shape
    # bf16 MXU operands + bf16-stored y -> compare to the pure-f32 reference
    # with a bf16-level tolerance (BN statistics / affine math stay in f32).
    max_err = float(jnp.max(jnp.abs(out.astype(jnp.float32) - ref)))
    assert max_err < 5e-2, max_err

    print("KERNEL_OK")
</pallas_src>

<mosaic_0001>
module attributes {stable_mosaic.version = 11 : i64} {
  func.func @_conv_stats_kernel(%arg0: i32, %arg1: i32, %arg2: memref<400x128xbf16, #tpu.memory_space<vmem>>, %arg3: memref<128x128xbf16, #tpu.memory_space<vmem>>, %arg4: memref<400x128xbf16, #tpu.memory_space<vmem>>, %arg5: memref<1x2x128xf32, #tpu.memory_space<vmem>>) attributes {dimension_semantics = [#tpu.dimension_semantics<parallel>, #tpu.dimension_semantics<arbitrary>], iteration_bounds = array<i64: 1, 1>, scalar_prefetch = 0 : i64, scratch_operands = 0 : i64, tpu.core_type = #tpu.core_type<tc>, window_params = [{transform_indices = @transform_0, window_bounds = array<i64: 400, 128>}, {pipeline_mode = #tpu.pipeline_mode<synchronous>, transform_indices = @transform_1, window_bounds = array<i64: 128, 128>}, {transform_indices = @transform_2, window_bounds = array<i64: 400, 128>}, {transform_indices = @transform_3, window_bounds = array<i64: 1, 2, 128>}]} {
    %c0 = arith.constant 0 : index
    %c0_0 = arith.constant 0 : index
    %0 = vector.load %arg2[%c0, %c0_0] : memref<400x128xbf16, #tpu.memory_space<vmem>>, vector<400x128xbf16>
    %c0_1 = arith.constant 0 : index
    %c0_2 = arith.constant 0 : index
    %1 = vector.load %arg3[%c0_1, %c0_2] : memref<128x128xbf16, #tpu.memory_space<vmem>>, vector<128x128xbf16>
    %cst = arith.constant dense<0.000000e+00> : vector<400x128xf32>
    %2 = tpu.matmul %0, %1, %cst {dimension_numbers = #tpu.dot_dimension_numbers<[1], [0], [0], [1], [0, 0, 1, 1], [], []>} : vector<400x128xbf16>, vector<128x128xbf16>, vector<400x128xf32> -> vector<400x128xf32>
    %3 = arith.truncf %2 : vector<400x128xf32> to vector<400x128xbf16>
    %c0_3 = arith.constant 0 : index
    %c0_4 = arith.constant 0 : index
    %4 = vector.load %arg4[%c0_3, %c0_4] : memref<400x128xbf16, #tpu.memory_space<vmem>>, vector<400x128xbf16>
    tpu.vector_store %arg4[%c0_3, %c0_4], %3 {strides = array<i32>} : memref<400x128xbf16, #tpu.memory_space<vmem>>, vector<400x128xbf16>,
    %cst_5 = arith.constant 1.000000e+00 : f32
    %5 = vector.broadcast %cst_5 : f32 to vector<1x400xf32>
    %cst_6 = arith.constant dense<0.000000e+00> : vector<1x128xf32>
    %6 = tpu.matmul %5, %2, %cst_6 {dimension_numbers = #tpu.dot_dimension_numbers<[1], [0], [0], [1], [0, 0, 1, 1], [], []>} : vector<1x400xf32>, vector<400x128xf32>, vector<1x128xf32> -> vector<1x128xf32>
    %7 = arith.mulf %2, %2 : vector<400x128xf32>
    %cst_7 = arith.constant dense<0.000000e+00> : vector<1x128xf32>
    %8 = tpu.matmul %5, %7, %cst_7 {dimension_numbers = #tpu.dot_dimension_numbers<[1], [0], [0], [1], [0, 0, 1, 1], [], []>} : vector<1x400xf32>, vector<400x128xf32>, vector<1x128xf32> -> vector<1x128xf32>
    %c0_i32 = arith.constant 0 : i32
    %9 = arith.cmpi eq, %arg1, %c0_i32 : i32
    %10 = arith.extui %9 : i1 to i32
    %c0_i32_8 = arith.constant 0 : i32
    %11 = arith.cmpi ne, %10, %c0_i32_8 : i32
    scf.if %11 {
      %cst_15 = arith.constant 0.000000e+00 : f32
      %17 = vector.broadcast %cst_15 : f32 to vector<1x2x128xf32>
      %c0_16 = arith.constant 0 : index
      %c0_17 = arith.constant 0 : index
      %c0_18 = arith.constant 0 : index
      %18 = vector.load %arg5[%c0_16, %c0_17, %c0_18] : memref<1x2x128xf32, #tpu.memory_space<vmem>>, vector<1x2x128xf32>
      tpu.vector_store %arg5[%c0_16, %c0_17, %c0_18], %17 {strides = array<i32>} : memref<1x2x128xf32, #tpu.memory_space<vmem>>, vector<1x2x128xf32>,
    } else {
    }
    %c0_9 = arith.constant 0 : index
    %c0_10 = arith.constant 0 : index
    %c0_11 = arith.constant 0 : index
    %12 = vector.load %arg5[%c0_9, %c0_10, %c0_11] : memref<1x2x128xf32, #tpu.memory_space<vmem>>, vector<1x2x128xf32>
    %13 = tpu.concatenate %6, %8 in 0 : vector<1x128xf32>, vector<1x128xf32> -> vector<2x128xf32>
    %14 = vector.shape_cast %13 : vector<2x128xf32> to vector<1x2x128xf32>
    %15 = arith.addf %12, %14 : vector<1x2x128xf32>
    %c0_12 = arith.constant 0 : index
    %c0_13 = arith.constant 0 : index
    %c0_14 = arith.constant 0 : index
    %16 = vector.load %arg5[%c0_12, %c0_13, %c0_14] : memref<1x2x128xf32, #tpu.memory_space<vmem>>, vector<1x2x128xf32>
    tpu.vector_store %arg5[%c0_12, %c0_13, %c0_14], %15 {strides = array<i32>} : memref<1x2x128xf32, #tpu.memory_space<vmem>>, vector<1x2x128xf32>,
    return
  }
  func.func @transform_0(%arg0: i32, %arg1: i32) -> (i32, i32) {
    %c1_i32 = arith.constant 1 : i32
    %0 = arith.muli %arg0, %c1_i32 : i32
    %1 = arith.addi %0, %arg1 : i32
    %c0_i32 = arith.constant 0 : i32
    %c0_i32_0 = arith.constant 0 : i32
    return %1, %c0_i32 : i32, i32
  }
  func.func @transform_1(%arg0: i32, %arg1: i32) -> (i32, i32) {
    %c0_i32 = arith.constant 0 : i32
    %c0_i32_0 = arith.constant 0 : i32
    %c0_i32_1 = arith.constant 0 : i32
    return %c0_i32, %c0_i32_0 : i32, i32
  }
  func.func @transform_2(%arg0: i32, %arg1: i32) -> (i32, i32) {
    %c1_i32 = arith.constant 1 : i32
    %0 = arith.muli %arg0, %c1_i32 : i32
    %1 = arith.addi %0, %arg1 : i32
    %c0_i32 = arith.constant 0 : i32
    %c0_i32_0 = arith.constant 0 : i32
    return %1, %c0_i32 : i32, i32
  }
  func.func @transform_3(%arg0: i32, %arg1: i32) -> (i32, i32, i32) {
    %c0_i32 = arith.constant 0 : i32
    %c0_i32_0 = arith.constant 0 : i32
    %c0_i32_1 = arith.constant 0 : i32
    return %arg0, %c0_i32, %c0_i32_0 : i32, i32, i32
  }
}

module attributes {stable_mosaic.version = 11 : i64} {
  func.func @_bn_relu_kernel(%arg0: i32, %arg1: memref<400x128xbf16, #tpu.memory_space<vmem>>, %arg2: memref<1x128xf32, #tpu.memory_space<vmem>>, %arg3: memref<1x128xf32, #tpu.memory_space<vmem>>, %arg4: memref<400x128xbf16, #tpu.memory_space<vmem>>) attributes {dimension_semantics = [#tpu.dimension_semantics<parallel>], iteration_bounds = array<i64: 1>, scalar_prefetch = 0 : i64, scratch_operands = 0 : i64, tpu.core_type = #tpu.core_type<tc>, window_params = [{transform_indices = @transform_0, window_bounds = array<i64: 400, 128>}, {pipeline_mode = #tpu.pipeline_mode<synchronous>, transform_indices = @transform_1, window_bounds = array<i64: 1, 128>}, {pipeline_mode = #tpu.pipeline_mode<synchronous>, transform_indices = @transform_2, window_bounds = array<i64: 1, 128>}, {transform_indices = @transform_3, window_bounds = array<i64: 400, 128>}]} {
    %c0 = arith.constant 0 : index
    %c0_0 = arith.constant 0 : index
    %0 = vector.load %arg1[%c0, %c0_0] : memref<400x128xbf16, #tpu.memory_space<vmem>>, vector<400x128xbf16>
    %1 = arith.extf %0 : vector<400x128xbf16> to vector<400x128xf32>
    %c0_1 = arith.constant 0 : index
    %c0_2 = arith.constant 0 : index
    %2 = vector.load %arg2[%c0_1, %c0_2] : memref<1x128xf32, #tpu.memory_space<vmem>>, vector<1x128xf32>
    %3 = vector.broadcast %2 : vector<1x128xf32> to vector<400x128xf32>
    %4 = arith.mulf %1, %3 : vector<400x128xf32>
    %c0_3 = arith.constant 0 : index
    %c0_4 = arith.constant 0 : index
    %5 = vector.load %arg3[%c0_3, %c0_4] : memref<1x128xf32, #tpu.memory_space<vmem>>, vector<1x128xf32>
    %6 = vector.broadcast %5 : vector<1x128xf32> to vector<400x128xf32>
    %7 = arith.addf %4, %6 : vector<400x128xf32>
    %cst = arith.constant 0.000000e+00 : f32
    %8 = vector.broadcast %cst : f32 to vector<400x128xf32>
    %9 = arith.maximumf %7, %8 : vector<400x128xf32>
    %10 = arith.truncf %9 : vector<400x128xf32> to vector<400x128xbf16>
    %c0_5 = arith.constant 0 : index
    %c0_6 = arith.constant 0 : index
    %11 = vector.load %arg4[%c0_5, %c0_6] : memref<400x128xbf16, #tpu.memory_space<vmem>>, vector<400x128xbf16>
    tpu.vector_store %arg4[%c0_5, %c0_6], %10 {strides = array<i32>} : memref<400x128xbf16, #tpu.memory_space<vmem>>, vector<400x128xbf16>,
    return
  }
  func.func @transform_0(%arg0: i32) -> (i32, i32) {
    %c0_i32 = arith.constant 0 : i32
    %c0_i32_0 = arith.constant 0 : i32
    return %arg0, %c0_i32 : i32, i32
  }
  func.func @transform_1(%arg0: i32) -> (i32, i32) {
    %c0_i32 = arith.constant 0 : i32
    %c0_i32_0 = arith.constant 0 : i32
    %c0_i32_1 = arith.constant 0 : i32
    return %c0_i32, %c0_i32_0 : i32, i32
  }
  func.func @transform_2(%arg0: i32) -> (i32, i32) {
    %c0_i32 = arith.constant 0 : i32
    %c0_i32_0 = arith.constant 0 : i32
    %c0_i32_1 = arith.constant 0 : i32
    return %c0_i32, %c0_i32_0 : i32, i32
  }
  func.func @transform_3(%arg0: i32) -> (i32, i32) {
    %c0_i32 = arith.constant 0 : i32
    %c0_i32_0 = arith.constant 0 : i32
    return %arg0, %c0_i32 : i32, i32
  }
}

</mosaic_0001>

<bundles_post_ra>
// kernel: conv_norm_act.3
= control target key start
LH: loop header
LB: loop body
LE: loop exit
PB: predicated region body
PF: predicated region fallthrough
CT: control target
= control target key end

     0   :  { %s1187_s0 = inlined_call_operand.vmem [shape: bf16[400,128], index: 0, kind: input, shape index: {}, may-alias: {0,3}]   ;;  %s1188_s1 = inlined_call_operand.vmem [shape: f32[1,128], index: 1, kind: input, shape index: {}]   ;;  %s1189_s2 = inlined_call_operand.vmem [shape: f32[1,128], index: 2, kind: input, shape index: {}]   ;;  %s1190_s3 = inlined_call_operand.vmem [shape: bf16[400,128], index: 3, kind: output, shape index: {}, may-alias: {0,3}]  }
   0x1   :  { %v635_v0 = vld [vmem:[%s1187_s0] sm:$0xff]   ;;  %v859_v4 = vld [vmem:[%s1187_s0 + $0x8] sm:$0xff]   ;;  %v860_v5 = vld [vmem:[%s1187_s0 + $0x10] sm:$0xff]  }
   0x2   :  { %v933_v1 = vld [vmem:[%s1188_s1] ss:$0 sm:$0xff]  ;;  %v636_v2 = vunpack.c.l.bf16 %v635_v0  ;;  %v637_v3 = vunpack.c.h.bf16 %v635_v0  ;;  %v861_v6 = vld [vmem:[%s1187_s0 + $0x18] sm:$0xff]   ;;  %v640_v8 = vunpack.c.l.bf16 %v859_v4  ;;  %v641_v9 = vunpack.c.h.bf16 %v859_v4  ;;  %v863_v33 = vld [vmem:[%s1187_s0 + $0x28] sm:$0xff]  }
   0x3   :  { %v947_v7 = vld [vmem:[%s1189_s2] ss:$0 sm:$0xff]  ;;  %v644_v10 = vunpack.c.l.bf16 %v860_v5  ;;  %v645_v11 = vunpack.c.h.bf16 %v860_v5  ;;  %v648_v14 = vunpack.c.l.bf16 %v861_v6  ;;  %v649_v15 = vunpack.c.h.bf16 %v861_v6  ;;  %v864_v38 = vld [vmem:[%s1187_s0 + $0x30] sm:$0xff]   ;;  %v865_v43 = vld [vmem:[%s1187_s0 + $0x38] sm:$0xff]  }
   0x4   :  { %v121_v12 = vmul.f32 %v636_v2, %v933_v1  ;;  %v122_v13 = vmul.f32 %v637_v3, %v933_v1  ;;  %v123_v16 = vmul.f32 %v640_v8, %v933_v1  ;;  %v124_v17 = vmul.f32 %v641_v9, %v933_v1  ;;  %v862_v28 = vld [vmem:[%s1187_s0 + $0x20] sm:$0xff]  }
   0x5   :  { %v125_v18 = vmul.f32 %v644_v10, %v933_v1  ;;  %v126_v19 = vmul.f32 %v645_v11, %v933_v1  ;;  %v127_v22 = vmul.f32 %v648_v14, %v933_v1  ;;  %v128_v23 = vmul.f32 %v649_v15, %v933_v1 }
   0x6   :  { %v178_v20 = vadd.f32 %v947_v7, %v121_v12  ;;  %v179_v21 = vadd.f32 %v947_v7, %v122_v13  ;;  %v180_v24 = vadd.f32 %v947_v7, %v123_v16  ;;  %v181_v25 = vadd.f32 %v947_v7, %v124_v17 }
   0x7   :  { %v182_v26 = vadd.f32 %v947_v7, %v125_v18  ;;  %v183_v27 = vadd.f32 %v947_v7, %v126_v19  ;;  %v184_v31 = vadd.f32 %v947_v7, %v127_v22  ;;  %v185_v32 = vadd.f32 %v947_v7, %v128_v23 }
   0x8   :  { %v228_v29 = vmax.f32 %v178_v20, 0.0  ;;  %v229_v30 = vmax.f32 %v179_v21, 0.0  ;;  %v230_v34 = vmax.f32 %v180_v24, 0.0  ;;  %v231_v35 = vmax.f32 %v181_v25, 0.0 }
   0x9   :  { %v232_v36 = vmax.f32 %v182_v26, 0.0  ;;  %v233_v37 = vmax.f32 %v183_v27, 0.0  ;;  %v234_v40 = vmax.f32 %v184_v31, 0.0  ;;  %v235_v41 = vmax.f32 %v185_v32, 0.0 }
   0xa   :  { %v737_v39 = vpack.c.bf16 %v229_v30, %v228_v29  ;;  %v652_v42 = vunpack.c.l.bf16 %v862_v28  ;;  %v742_v44 = vpack.c.bf16 %v231_v35, %v230_v34  ;;  %v653_v46 = vunpack.c.h.bf16 %v862_v28 }
   0xb   :  { %v747_v45 = vpack.c.bf16 %v233_v37, %v232_v36  ;;  %v656_v47 = vunpack.c.l.bf16 %v863_v33  ;;  %v752_v48 = vpack.c.bf16 %v235_v41, %v234_v40  ;;  %v657_v50 = vunpack.c.h.bf16 %v863_v33 }
   0xc   :  { %738 = vst [vmem:[%s1190_s3] sm:$0xff] %v737_v39   ;;  %v129_v49 = vmul.f32 %v652_v42, %v933_v1  ;;  %v660_v51 = vunpack.c.l.bf16 %v864_v38  ;;  %883 = vst [vmem:[%s1190_s3 + $0x8] sm:$0xff] %v742_v44   ;;  %v130_v52 = vmul.f32 %v653_v46, %v933_v1  ;;  %v661_v54 = vunpack.c.h.bf16 %v864_v38 }
   0xd   :  { %884 = vst [vmem:[%s1190_s3 + $0x10] sm:$0xff] %v747_v45   ;;  %v131_v53 = vmul.f32 %v656_v47, %v933_v1  ;;  %v664_v55 = vunpack.c.l.bf16 %v865_v43  ;;  %885 = vst [vmem:[%s1190_s3 + $0x18] sm:$0xff] %v752_v48   ;;  %v132_v57 = vmul.f32 %v657_v50, %v933_v1  ;;  %v665_v59 = vunpack.c.h.bf16 %v865_v43 }
   0xe   :  { %v186_v56 = vadd.f32 %v947_v7, %v129_v49  ;;  %v133_v58 = vmul.f32 %v660_v51, %v933_v1  ;;  %v187_v60 = vadd.f32 %v947_v7, %v130_v52  ;;  %v134_v62 = vmul.f32 %v661_v54, %v933_v1 }
   0xf   :  { %v188_v61 = vadd.f32 %v947_v7, %v131_v53  ;;  %v135_v63 = vmul.f32 %v664_v55, %v933_v1  ;;  %v189_v3 = vadd.f32 %v947_v7, %v132_v57  ;;  %v136_v5 = vmul.f32 %v665_v59, %v933_v1 }
  0x10   :  { %v236_v2 = vmax.f32 %v186_v56, 0.0  ;;  %v190_v4 = vadd.f32 %v947_v7, %v133_v58  ;;  %v237_v6 = vmax.f32 %v187_v60, 0.0  ;;  %v191_v9 = vadd.f32 %v947_v7, %v134_v62 }
  0x11   :  { %v238_v8 = vmax.f32 %v188_v61, 0.0  ;;  %v192_v10 = vadd.f32 %v947_v7, %v135_v63  ;;  %v239_v12 = vmax.f32 %v189_v3, 0.0  ;;  %v193_v14 = vadd.f32 %v947_v7, %v136_v5 }
  0x12   :  { %v240_v13 = vmax.f32 %v190_v4, 0.0  ;;  %v757_v17 = vpack.c.bf16 %v237_v6, %v236_v2  ;;  %v241_v18 = vmax.f32 %v191_v9, 0.0 }
  0x13   :  { %v242_v19 = vmax.f32 %v192_v10, 0.0  ;;  %v762_v21 = vpack.c.bf16 %v239_v12, %v238_v8  ;;  %v243_v22 = vmax.f32 %v193_v14, 0.0 }
  0x14   :  { %v866_v0 = vld [vmem:[%s1187_s0 + $0x40] sm:$0xff]   ;;  %v867_v11 = vld [vmem:[%s1187_s0 + $0x48] sm:$0xff]   ;;  %v868_v16 = vld [vmem:[%s1187_s0 + $0x50] sm:$0xff]   ;;  %v767_v26 = vpack.c.bf16 %v241_v18, %v240_v13 }
  0x15   :  { %v668_v15 = vunpack.c.l.bf16 %v866_v0  ;;  %v669_v20 = vunpack.c.h.bf16 %v866_v0  ;;  %v672_v24 = vunpack.c.l.bf16 %v867_v11  ;;  %v869_v25 = vld [vmem:[%s1187_s0 + $0x58] sm:$0xff]   ;;  %v673_v28 = vunpack.c.h.bf16 %v867_v11 }
  0x16   :  { %886 = vst [vmem:[%s1190_s3 + $0x20] sm:$0xff] %v757_v17   ;;  %v676_v29 = vunpack.c.l.bf16 %v868_v16  ;;  %887 = vst [vmem:[%s1190_s3 + $0x28] sm:$0xff] %v762_v21   ;;  %v772_v30 = vpack.c.bf16 %v243_v22, %v242_v19  ;;  %v677_v33 = vunpack.c.h.bf16 %v868_v16  ;;  %v680_v37 = vunpack.c.l.bf16 %v869_v25 }
  0x17   :  { %v137_v23 = vmul.f32 %v668_v15, %v933_v1  ;;  %v138_v27 = vmul.f32 %v669_v20, %v933_v1  ;;  %v139_v32 = vmul.f32 %v672_v24, %v933_v1  ;;  %888 = vst [vmem:[%s1190_s3 + $0x30] sm:$0xff] %v767_v26   ;;  %v140_v35 = vmul.f32 %v673_v28, %v933_v1 }
  0x18   :  { %v141_v36 = vmul.f32 %v676_v29, %v933_v1  ;;  %v142_v41 = vmul.f32 %v677_v33, %v933_v1  ;;  %v681_v42 = vunpack.c.h.bf16 %v869_v25  ;;  %v143_v46 = vmul.f32 %v680_v37, %v933_v1 }
  0x19   :  { %v194_v31 = vadd.f32 %v947_v7, %v137_v23  ;;  %v195_v34 = vadd.f32 %v947_v7, %v138_v27  ;;  %v196_v40 = vadd.f32 %v947_v7, %v139_v32  ;;  %v197_v44 = vadd.f32 %v947_v7, %v140_v35 }
  0x1a   :  { %v198_v45 = vadd.f32 %v947_v7, %v141_v36  ;;  %v199_v48 = vadd.f32 %v947_v7, %v142_v41  ;;  %v144_v49 = vmul.f32 %v681_v42, %v933_v1  ;;  %v200_v55 = vadd.f32 %v947_v7, %v143_v46 }
  0x1b   :  { %v244_v39 = vmax.f32 %v194_v31, 0.0  ;;  %v245_v43 = vmax.f32 %v195_v34, 0.0  ;;  %v246_v47 = vmax.f32 %v196_v40, 0.0  ;;  %v247_v53 = vmax.f32 %v197_v44, 0.0 }
  0x1c   :  { %v248_v54 = vmax.f32 %v198_v45, 0.0  ;;  %v249_v56 = vmax.f32 %v199_v48, 0.0  ;;  %v201_v57 = vadd.f32 %v947_v7, %v144_v49  ;;  %v250_v62 = vmax.f32 %v200_v55, 0.0 }
  0x1d   :  { %v777_v52 = vpack.c.bf16 %v245_v43, %v244_v39  ;;  %v782_v61 = vpack.c.bf16 %v247_v53, %v246_v47 }
  0x1e   :  { %v870_v38 = vld [vmem:[%s1187_s0 + $0x60] sm:$0xff]   ;;  %v787_v3 = vpack.c.bf16 %v249_v56, %v248_v54  ;;  %v251_v4 = vmax.f32 %v201_v57, 0.0 }
  0x1f   :  { %889 = vst [vmem:[%s1190_s3 + $0x38] sm:$0xff] %v772_v30   ;;  %v684_v50 = vunpack.c.l.bf16 %v870_v38  ;;  %v685_v58 = vunpack.c.h.bf16 %v870_v38 }
  0x20   :  { %v792_v13 = vpack.c.bf16 %v251_v4, %v250_v62 }
  0x21   :  { %v145_v59 = vmul.f32 %v684_v50, %v933_v1  ;;  %v146_v5 = vmul.f32 %v685_v58, %v933_v1 }
  0x23   :  { %v202_v6 = vadd.f32 %v947_v7, %v145_v59  ;;  %v203_v14 = vadd.f32 %v947_v7, %v146_v5 }
  0x25   :  { %v252_v15 = vmax.f32 %v202_v6, 0.0  ;;  %v253_v21 = vmax.f32 %v203_v14, 0.0 }
  0x26   :  { %v871_v51 = vld [vmem:[%s1187_s0 + $0x68] sm:$0xff]   ;;  %v872_v60 = vld [vmem:[%s1187_s0 + $0x70] sm:$0xff]  }
  0x27   :  { %890 = vst [vmem:[%s1190_s3 + $0x40] sm:$0xff] %v777_v52   ;;  %v688_v63 = vunpack.c.l.bf16 %v871_v51  ;;  %v689_v0 = vunpack.c.h.bf16 %v871_v51  ;;  %v692_v10 = vunpack.c.l.bf16 %v872_v60  ;;  %v693_v11 = vunpack.c.h.bf16 %v872_v60 }
  0x28   :  { %v797_v30 = vpack.c.bf16 %v253_v21, %v252_v15 }
  0x29   :  { %v147_v8 = vmul.f32 %v688_v63, %v933_v1  ;;  %v148_v9 = vmul.f32 %v689_v0, %v933_v1  ;;  %v149_v19 = vmul.f32 %v692_v10, %v933_v1  ;;  %v150_v20 = vmul.f32 %v693_v11, %v933_v1 }
  0x2b   :  { %v204_v17 = vadd.f32 %v947_v7, %v147_v8  ;;  %v205_v18 = vadd.f32 %v947_v7, %v148_v9  ;;  %v206_v27 = vadd.f32 %v947_v7, %v149_v19  ;;  %v207_v28 = vadd.f32 %v947_v7, %v150_v20 }
  0x2d   :  { %v254_v25 = vmax.f32 %v204_v17, 0.0  ;;  %v255_v26 = vmax.f32 %v205_v18, 0.0  ;;  %v256_v36 = vmax.f32 %v206_v27, 0.0  ;;  %v257_v37 = vmax.f32 %v207_v28, 0.0 }
  0x2e   :  { %v873_v2 = vld [vmem:[%s1187_s0 + $0x78] sm:$0xff]  }
  0x2f   :  { %891 = vst [vmem:[%s1190_s3 + $0x48] sm:$0xff] %v782_v61   ;;  %v696_v16 = vunpack.c.l.bf16 %v873_v2  ;;  %v697_v22 = vunpack.c.h.bf16 %v873_v2  ;;  %v802_v35 = vpack.c.bf16 %v255_v26, %v254_v25  ;;  %v807_v44 = vpack.c.bf16 %v257_v37, %v256_v36 }
  0x31   :  { %v151_v23 = vmul.f32 %v696_v16, %v933_v1  ;;  %v152_v31 = vmul.f32 %v697_v22, %v933_v1 }
  0x33   :  { %v208_v32 = vadd.f32 %v947_v7, %v151_v23  ;;  %v209_v39 = vadd.f32 %v947_v7, %v152_v31 }
  0x35   :  { %v258_v40 = vmax.f32 %v208_v32, 0.0  ;;  %v259_v48 = vmax.f32 %v209_v39, 0.0 }
  0x36   :  { %v874_v12 = vld [vmem:[%s1187_s0 + $0x80] sm:$0xff]  }
  0x37   :  { %892 = vst [vmem:[%s1190_s3 + $0x50] sm:$0xff] %v787_v3   ;;  %893 = vst [vmem:[%s1190_s3 + $0x58] sm:$0xff] %v792_v13   ;;  %v700_v24 = vunpack.c.l.bf16 %v874_v12  ;;  %v701_v33 = vunpack.c.h.bf16 %v874_v12  ;;  %v812_v57 = vpack.c.bf16 %v259_v48, %v258_v40 }
  0x39   :  { %v153_v38 = vmul.f32 %v700_v24, %v933_v1  ;;  %v154_v41 = vmul.f32 %v701_v33, %v933_v1 }
  0x3b   :  { %v210_v45 = vadd.f32 %v947_v7, %v153_v38  ;;  %v211_v49 = vadd.f32 %v947_v7, %v154_v41 }
  0x3d   :  { %v260_v52 = vmax.f32 %v210_v45, 0.0  ;;  %v261_v58 = vmax.f32 %v211_v49, 0.0 }
  0x3e   :  { %v875_v29 = vld [vmem:[%s1187_s0 + $0x88] sm:$0xff]   ;;  %v876_v34 = vld [vmem:[%s1187_s0 + $0x90] sm:$0xff]  }
  0x3f   :  { %894 = vst [vmem:[%s1190_s3 + $0x60] sm:$0xff] %v797_v30   ;;  %v704_v42 = vunpack.c.l.bf16 %v875_v29  ;;  %v705_v46 = vunpack.c.h.bf16 %v875_v29  ;;  %v708_v47 = vunpack.c.l.bf16 %v876_v34  ;;  %v709_v51 = vunpack.c.h.bf16 %v876_v34 }
  0x40   :  { %v817_v3 = vpack.c.bf16 %v261_v58, %v260_v52 }
  0x41   :  { %v155_v50 = vmul.f32 %v704_v42, %v933_v1  ;;  %v156_v53 = vmul.f32 %v705_v46, %v933_v1  ;;  %v157_v54 = vmul.f32 %v708_v47, %v933_v1  ;;  %v158_v60 = vmul.f32 %v709_v51, %v933_v1 }
  0x43   :  { %v212_v59 = vadd.f32 %v947_v7, %v155_v50  ;;  %v213_v61 = vadd.f32 %v947_v7, %v156_v53  ;;  %v214_v62 = vadd.f32 %v947_v7, %v157_v54  ;;  %v215_v5 = vadd.f32 %v947_v7, %v158_v60 }
  0x45   :  { %v262_v4 = vmax.f32 %v212_v59, 0.0  ;;  %v263_v8 = vmax.f32 %v213_v61, 0.0  ;;  %v264_v9 = vmax.f32 %v214_v62, 0.0  ;;  %v265_v12 = vmax.f32 %v215_v5, 0.0 }
  0x46   :  { %v877_v43 = vld [vmem:[%s1187_s0 + $0x98] sm:$0xff]  }
  0x47   :  { %895 = vst [vmem:[%s1190_s3 + $0x68] sm:$0xff] %v802_v35   ;;  %896 = vst [vmem:[%s1190_s3 + $0x70] sm:$0xff] %v807_v44   ;;  %v712_v55 = vunpack.c.l.bf16 %v877_v43  ;;  %v713_v63 = vunpack.c.h.bf16 %v877_v43  ;;  %v822_v17 = vpack.c.bf16 %v263_v8, %v262_v4  ;;  %v827_v22 = vpack.c.bf16 %v265_v12, %v264_v9 }
  0x49   :  { %v159_v0 = vmul.f32 %v712_v55, %v933_v1  ;;  %v160_v10 = vmul.f32 %v713_v63, %v933_v1 }
  0x4b   :  { %v216_v11 = vadd.f32 %v947_v7, %v159_v0  ;;  %v217_v18 = vadd.f32 %v947_v7, %v160_v10 }
  0x4d   :  { %v266_v19 = vmax.f32 %v216_v11, 0.0  ;;  %v267_v26 = vmax.f32 %v217_v18, 0.0 }
  0x4e   :  { %v878_v56 = vld [vmem:[%s1187_s0 + $0xa0] sm:$0xff]   ;;  %v879_v2 = vld [vmem:[%s1187_s0 + $0xa8] sm:$0xff]  }
  0x4f   :  { %897 = vst [vmem:[%s1190_s3 + $0x78] sm:$0xff] %v812_v57   ;;  %v716_v6 = vunpack.c.l.bf16 %v878_v56  ;;  %898 = vst [vmem:[%s1190_s3 + $0x80] sm:$0xff] %v817_v3   ;;  %v717_v13 = vunpack.c.h.bf16 %v878_v56  ;;  %v720_v15 = vunpack.c.l.bf16 %v879_v2  ;;  %v721_v20 = vunpack.c.h.bf16 %v879_v2 }
  0x50   :  { %v832_v35 = vpack.c.bf16 %v267_v26, %v266_v19 }
  0x51   :  { %v161_v14 = vmul.f32 %v716_v6, %v933_v1  ;;  %v162_v23 = vmul.f32 %v717_v13, %v933_v1  ;;  %v163_v25 = vmul.f32 %v720_v15, %v933_v1  ;;  %v164_v27 = vmul.f32 %v721_v20, %v933_v1 }
  0x53   :  { %v218_v24 = vadd.f32 %v947_v7, %v161_v14  ;;  %v219_v30 = vadd.f32 %v947_v7, %v162_v23  ;;  %v220_v32 = vadd.f32 %v947_v7, %v163_v25  ;;  %v221_v36 = vadd.f32 %v947_v7, %v164_v27 }
  0x55   :  { %v268_v31 = vmax.f32 %v218_v24, 0.0  ;;  %v269_v39 = vmax.f32 %v219_v30, 0.0  ;;  %v270_v40 = vmax.f32 %v220_v32, 0.0  ;;  %v271_v43 = vmax.f32 %v221_v36, 0.0 }
  0x56   :  { %v880_v16 = vld [vmem:[%s1187_s0 + $0xb0] sm:$0xff]   ;;  %v881_v21 = vld [vmem:[%s1187_s0 + $0xb8] sm:$0xff]  }
  0x57   :  { %899 = vst [vmem:[%s1190_s3 + $0x88] sm:$0xff] %v822_v17   ;;  %v724_v28 = vunpack.c.l.bf16 %v880_v16  ;;  %v725_v29 = vunpack.c.h.bf16 %v880_v16  ;;  %900 = vst [vmem:[%s1190_s3 + $0x90] sm:$0xff] %v827_v22   ;;  %v728_v33 = vunpack.c.l.bf16 %v881_v21  ;;  %v729_v41 = vunpack.c.h.bf16 %v881_v21 }
  0x58   :  { %v837_v47 = vpack.c.bf16 %v269_v39, %v268_v31  ;;  %v842_v51 = vpack.c.bf16 %v271_v43, %v270_v40 }
  0x59   :  { %v165_v37 = vmul.f32 %v724_v28, %v933_v1  ;;  %v166_v38 = vmul.f32 %v725_v29, %v933_v1  ;;  %v167_v42 = vmul.f32 %v728_v33, %v933_v1  ;;  %v168_v48 = vmul.f32 %v729_v41, %v933_v1 }
  0x5b   :  { %v222_v44 = vadd.f32 %v947_v7, %v165_v37  ;;  %v223_v45 = vadd.f32 %v947_v7, %v166_v38  ;;  %v224_v49 = vadd.f32 %v947_v7, %v167_v42  ;;  %v225_v55 = vadd.f32 %v947_v7, %v168_v48 }
  0x5d   :  { %v272_v52 = vmax.f32 %v222_v44, 0.0  ;;  %v273_v53 = vmax.f32 %v223_v45, 0.0  ;;  %v274_v56 = vmax.f32 %v224_v49, 0.0  ;;  %v275_v60 = vmax.f32 %v225_v55, 0.0 }
  0x5e   :  { %v882_v34 = vld [vmem:[%s1187_s0 + $0xc0] sm:$0xff]  }
  0x5f   :  { %901 = vst [vmem:[%s1190_s3 + $0x98] sm:$0xff] %v832_v35   ;;  %v732_v46 = vunpack.c.l.bf16 %v882_v34  ;;  %v733_v50 = vunpack.c.h.bf16 %v882_v34  ;;  %902 = vst [vmem:[%s1190_s3 + $0xa0] sm:$0xff] %v837_v47   ;;  %v847_v58 = vpack.c.bf16 %v273_v53, %v272_v52  ;;  %v852_v63 = vpack.c.bf16 %v275_v60, %v274_v56 }
  0x60   :  { %903 = vst [vmem:[%s1190_s3 + $0xa8] sm:$0xff] %v842_v51  }
  0x61   :  { %v169_v54 = vmul.f32 %v732_v46, %v933_v1  ;;  %v170_v57 = vmul.f32 %v733_v50, %v933_v1  ;;  %904 = vst [vmem:[%s1190_s3 + $0xb0] sm:$0xff] %v847_v58   ;;  %905 = vst [vmem:[%s1190_s3 + $0xb8] sm:$0xff] %v852_v63  }
  0x63   :  { %v226_v59 = vadd.f32 %v947_v7, %v169_v54  ;;  %v227_v61 = vadd.f32 %v947_v7, %v170_v57 }
  0x65   :  { %v276_v62 = vmax.f32 %v226_v59, 0.0  ;;  %v277_v0 = vmax.f32 %v227_v61, 0.0 }
  0x67   :  { %v857_v1 = vpack.c.bf16 %v277_v0, %v276_v62 }
  0x69   :  { %906 = vst [vmem:[%s1190_s3 + $0xc0] sm:$0xff] %v857_v1  }

// kernel: conv_norm_act.2
= control target key start
LH: loop header
LB: loop body
LE: loop exit
PB: predicated region body
PF: predicated region fallthrough
CT: control target
= control target key end

     0   :  { %v1735_v0 = vmov 0.0   ;;  %vm1736_vm0 = vmmov 0   ;;  %vm797_vm1 = vcmask 130048   ;;  %vm1140_vm2 = vcmask 1040384   ;;  %s2354_s1 = inlined_call_operand.vmem [shape: bf16[128,128], index: 1, kind: input, shape index: {}]   ;;  %s2355_s0 = inlined_call_operand.vmem [shape: bf16[400,128], index: 0, kind: input, shape index: {}]   ;;  %s2356_s2 = inlined_call_operand.vmem [shape: bf16[400,128], index: 2, kind: output, shape index: {0}]   ;;  %s2357_s3 = inlined_call_operand.vmem [shape: f32[1,2,128], index: 3, kind: output, shape index: {1}]  }
   0x1   :  { %1567 = vmatprep.subr.bf16.mxu0 %v1735_v0  ;;  %v1702_v1 = vld [vmem:[%s2354_s1 + $0x38] sm:$0xff]   ;;  %1583 = vmatprep.mubr.msk.bf16.mxu0 %vm1736_vm0, %v1735_v0  ;;  %v1703_v2 = vld [vmem:[%s2354_s1 + $0x30] sm:$0xff]   ;;  %v1704_v3 = vld [vmem:[%s2354_s1 + $0x28] sm:$0xff]   ;;  %1135 = vst [vmem:[%s2357_s3] sm:$0x3] %v1735_v0 }
   0x2   :  { %1683 = vmatprep.subr.bf16.mxu1 %v1735_v0  ;;  %1663 = vmatprep.mubr.msk.bf16.mxu1 %vm1736_vm0, %v1735_v0  ;;  %v1705_v4 = vld [vmem:[%s2354_s1 + $0x20] sm:$0xff]   ;;  %v1706_v5 = vld [vmem:[%s2354_s1 + $0x18] sm:$0xff]   ;;  %v1707_v6 = vld [vmem:[%s2354_s1 + $0x10] sm:$0xff]  }
   0x3   :  { %1568 = vmatpush3.bf16.msra.mxu0 %v1702_v1  ;;  %1691 = vmatpush3.bf16.msra.mxu1 %v1702_v1  ;;  %v1708_v7 = vld [vmem:[%s2354_s1 + $0x8] sm:$0xff]   ;;  %v1709_v8 = vld [vmem:[%s2354_s1] sm:$0xff]   ;;  %v1712_v13 = vld [vmem:[%s2355_s0 + $0x10] sm:$0xff]  }
   0x4   :  { %1569 = vmatprep.subr.bf16.mxu0 %v1735_v0  ;;  %1684 = vmatprep.subr.bf16.mxu1 %v1735_v0  ;;  %v1710_v9 = vld [vmem:[%s2355_s0] sm:$0xff]   ;;  %v1711_v11 = vld [vmem:[%s2355_s0 + $0x8] sm:$0xff]   ;;  %v1729_v14 = vld [vmem:[%s2355_s0 + $0xb0] sm:$0xff]  }
   0x5   :  { %v1726_v10 = vld [vmem:[%s2355_s0 + $0xa0] sm:$0xff]   ;;  %v1727_v12 = vld [vmem:[%s2355_s0 + $0xa8] sm:$0xff]   ;;  %v1713_v15 = vld [vmem:[%s2355_s0 + $0x18] sm:$0xff]  }
   0x6   :  { %v1731_v16 = vld [vmem:[%s2355_s0 + $0xb8] sm:$0xff]   ;;  %v1714_v17 = vld [vmem:[%s2355_s0 + $0x20] sm:$0xff]   ;;  %v1715_v19 = vld [vmem:[%s2355_s0 + $0x28] sm:$0xff]  }
   0x7   :  { %1570 = vmatpush3.bf16.msra.mxu0 %v1703_v2  ;;  %1692 = vmatpush3.bf16.msra.mxu1 %v1703_v2  ;;  %v1734_v18 = vld [vmem:[%s2355_s0 + $0xc0] sm:$0xff]   ;;  %v1716_v20 = vld [vmem:[%s2355_s0 + $0x30] sm:$0xff]   ;;  %v1717_v21 = vld [vmem:[%s2355_s0 + $0x38] sm:$0xff]  }
   0x8   :  { %1571 = vmatprep.subr.bf16.mxu0 %v1735_v0  ;;  %1685 = vmatprep.subr.bf16.mxu1 %v1735_v0  ;;  %v1718_v22 = vld [vmem:[%s2355_s0 + $0x40] sm:$0xff]   ;;  %v1719_v23 = vld [vmem:[%s2355_s0 + $0x48] sm:$0xff]   ;;  %v1720_v24 = vld [vmem:[%s2355_s0 + $0x50] sm:$0xff]  }
   0x9   :  { %v1721_v25 = vld [vmem:[%s2355_s0 + $0x58] sm:$0xff]   ;;  %v1722_v26 = vld [vmem:[%s2355_s0 + $0x60] sm:$0xff]   ;;  %v1723_v27 = vld [vmem:[%s2355_s0 + $0x68] sm:$0xff]  }
   0xa   :  { %v1724_v28 = vld [vmem:[%s2355_s0 + $0x70] sm:$0xff]   ;;  %v1725_v29 = vld [vmem:[%s2355_s0 + $0x78] sm:$0xff]   ;;  %v1728_v30 = vld [vmem:[%s2355_s0 + $0x80] sm:$0xff]  }
   0xb   :  { %1572 = vmatpush3.bf16.msra.mxu0 %v1704_v3  ;;  %1693 = vmatpush3.bf16.msra.mxu1 %v1704_v3  ;;  %v1730_v31 = vld [vmem:[%s2355_s0 + $0x88] sm:$0xff]   ;;  %v1732_v32 = vld [vmem:[%s2355_s0 + $0x90] sm:$0xff]   ;;  %v1733_v33 = vld [vmem:[%s2355_s0 + $0x98] sm:$0xff]  }
   0xc   :  { %1573 = vmatprep.subr.bf16.mxu0 %v1735_v0  ;;  %1686 = vmatprep.subr.bf16.mxu1 %v1735_v0 }
   0xf   :  { %1574 = vmatpush3.bf16.msra.mxu0 %v1705_v4  ;;  %1694 = vmatpush3.bf16.msra.mxu1 %v1705_v4 }
  0x10   :  { %1575 = vmatprep.subr.bf16.mxu0 %v1735_v0  ;;  %1687 = vmatprep.subr.bf16.mxu1 %v1735_v0 }
  0x13   :  { %1576 = vmatpush3.bf16.msra.mxu0 %v1706_v5  ;;  %1695 = vmatpush3.bf16.msra.mxu1 %v1706_v5 }
  0x14   :  { %1577 = vmatprep.subr.bf16.mxu0 %v1735_v0  ;;  %1688 = vmatprep.subr.bf16.mxu1 %v1735_v0 }
  0x17   :  { %1578 = vmatpush3.bf16.msra.mxu0 %v1707_v6  ;;  %1696 = vmatpush3.bf16.msra.mxu1 %v1707_v6 }
  0x18   :  { %1579 = vmatprep.subr.bf16.mxu0 %v1735_v0  ;;  %1689 = vmatprep.subr.bf16.mxu1 %v1735_v0 }
  0x1b   :  { %1580 = vmatpush3.bf16.msra.mxu0 %v1708_v7  ;;  %1697 = vmatpush3.bf16.msra.mxu1 %v1708_v7  ;;  %v1737_v7 = vmov 1.0  }
  0x1c   :  { %1581 = vmatprep.subr.bf16.mxu0 %v1735_v0  ;;  %1690 = vmatprep.subr.bf16.mxu1 %v1735_v0 }
  0x1f   :  { %1582 = vmatpush3.bf16.msra.mxu0 %v1709_v8  ;;  %1698 = vmatpush3.bf16.msra.mxu1 %v1709_v8 }
  0x22   :  { %1584 = vmatmul.mubr.bf16.vlgmr.msra.gmra.mxu0 %v1710_v9  ;;  %1664 = vmatmul.mubr.bf16.vlgmr.msra.gmra.mxu1 %v1726_v10 }
  0x23   :  { %1587 = vmatprep.mubr.msk.bf16.mxu0 %vm1736_vm0, %v1735_v0  ;;  %1667 = vmatprep.mubr.msk.bf16.mxu1 %vm1736_vm0, %v1735_v0 }
  0x2a   :  { %1588 = vmatmul.mubr.bf16.gmra.mxu0 %v1711_v11  ;;  %1668 = vmatmul.mubr.bf16.gmra.mxu1 %v1727_v12 }
  0x2b   :  { %1591 = vmatprep.mubr.msk.bf16.mxu0 %vm1736_vm0, %v1735_v0  ;;  %1671 = vmatprep.mubr.msk.bf16.mxu1 %vm1736_vm0, %v1735_v0 }
  0x32   :  { %1592 = vmatmul.mubr.bf16.gmra.mxu0 %v1712_v13  ;;  %1672 = vmatmul.mubr.bf16.gmra.mxu1 %v1729_v14 }
  0x33   :  { %1595 = vmatprep.mubr.msk.bf16.mxu0 %vm1736_vm0, %v1735_v0  ;;  %1675 = vmatprep.mubr.msk.bf16.mxu1 %vm1736_vm0, %v1735_v0 }
  0x3a   :  { %1596 = vmatmul.mubr.bf16.gmra.mxu0 %v1713_v15  ;;  %1676 = vmatmul.mubr.bf16.gmra.mxu1 %v1731_v16 }
  0x3b   :  { %1599 = vmatprep.mubr.msk.bf16.mxu0 %vm1736_vm0, %v1735_v0  ;;  %1679 = vmatprep.mubr.msk.bf16.mxu1 %vm1736_vm0, %v1735_v0 }
  0x42   :  { %1600 = vmatmul.mubr.bf16.gmra.mxu0 %v1714_v17  ;;  %1680 = vmatmul.mubr.bf16.gmra.mxu1 %v1734_v18 }
  0x43   :  { %1603 = vmatprep.mubr.msk.bf16.mxu0 %vm1736_vm0, %v1735_v0  ;;  %865 = vmatprep.mubr.f32.mxu1 %v1737_v7 }
  0x4a   :  { %1604 = vmatmul.mubr.bf16.gmra.mxu0 %v1715_v19 }
  0x4b   :  { %1607 = vmatprep.mubr.msk.bf16.mxu0 %vm1736_vm0, %v1735_v0 }
  0x52   :  { %1608 = vmatmul.mubr.bf16.gmra.mxu0 %v1716_v20 }
  0x53   :  { %1611 = vmatprep.mubr.msk.bf16.mxu0 %vm1736_vm0, %v1735_v0 }
  0x5a   :  { %1612 = vmatmul.mubr.bf16.gmra.mxu0 %v1717_v21 }
  0x5b   :  { %1615 = vmatprep.mubr.msk.bf16.mxu0 %vm1736_vm0, %v1735_v0 }
  0x62   :  { %1616 = vmatmul.mubr.bf16.gmra.mxu0 %v1718_v22 }
  0x63   :  { %1619 = vmatprep.mubr.msk.bf16.mxu0 %vm1736_vm0, %v1735_v0 }
  0x6a   :  { %1620 = vmatmul.mubr.bf16.gmra.mxu0 %v1719_v23 }
  0x6b   :  { %1623 = vmatprep.mubr.msk.bf16.mxu0 %vm1736_vm0, %v1735_v0 }
  0x72   :  { %1624 = vmatmul.mubr.bf16.gmra.mxu0 %v1720_v24 }
  0x73   :  { %1627 = vmatprep.mubr.msk.bf16.mxu0 %vm1736_vm0, %v1735_v0 }
  0x7a   :  { %1628 = vmatmul.mubr.bf16.gmra.mxu0 %v1721_v25 }
  0x7b   :  { %1631 = vmatprep.mubr.msk.bf16.mxu0 %vm1736_vm0, %v1735_v0 }
  0x82   :  { %1632 = vmatmul.mubr.bf16.gmra.mxu0 %v1722_v26 }
  0x83   :  { %1635 = vmatprep.mubr.msk.bf16.mxu0 %vm1736_vm0, %v1735_v0 }
  0x8a   :  { %1636 = vmatmul.mubr.bf16.gmra.mxu0 %v1723_v27 }
  0x8b   :  { %1639 = vmatprep.mubr.msk.bf16.mxu0 %vm1736_vm0, %v1735_v0 }
  0x92   :  { %1640 = vmatmul.mubr.bf16.gmra.mxu0 %v1724_v28 }
  0x93   :  { %1643 = vmatprep.mubr.msk.bf16.mxu0 %vm1736_vm0, %v1735_v0 }
  0x9a   :  { %1644 = vmatmul.mubr.bf16.gmra.mxu0 %v1725_v29 }
  0x9b   :  { %1647 = vmatprep.mubr.msk.bf16.mxu0 %vm1736_vm0, %v1735_v0 }
  0xa2   :  { %1648 = vmatmul.mubr.bf16.gmra.mxu0 %v1728_v30 }
  0xa3   :  { %1651 = vmatprep.mubr.msk.bf16.mxu0 %vm1736_vm0, %v1735_v0 }
  0xaa   :  { %1652 = vmatmul.mubr.bf16.gmra.mxu0 %v1730_v31 }
  0xab   :  { %1655 = vmatprep.mubr.msk.bf16.mxu0 %vm1736_vm0, %v1735_v0 }
  0xb2   :  { %1656 = vmatmul.mubr.bf16.gmra.mxu0 %v1732_v32 }
  0xb3   :  { %1659 = vmatprep.mubr.msk.bf16.mxu0 %vm1736_vm0, %v1735_v0 }
  0xba   :  { %1660 = vmatmul.mubr.bf16.gmra.mxu0 %v1733_v33 }
  0xe2   :  { %v1923_v34 = vpop.f32.mrf.mxu0  ;;  %v1925_v35 = vpop.f32.mrf.mxu1 }
  0xe4   :  { %v1585_v36 = vpop.f32.mrf.mxu0  ;;  %v1665_v37 = vpop.f32.mrf.mxu1 }
  0xe6   :  { %v1927_v38 = vpop.f32.mrf.mxu0  ;;  %v1929_v39 = vpop.f32.mrf.mxu1 }
  0xe7   :  { %v1318_v40 = vpack.c.bf16 %v1927_v38, %v1923_v34  ;;  %v1418_v41 = vpack.c.bf16 %v1929_v39, %v1925_v35 }
  0xe8   :  { %v1586_v42 = vpop.f32.mrf.mxu0  ;;  %v1666_v43 = vpop.f32.mrf.mxu1 }
  0xe9   :  { %1319 = vst [vmem:[%s2356_s2] sm:$0xff] %v1318_v40   ;;  %1459 = vst [vmem:[%s2356_s2 + $0xa0] sm:$0xff] %v1418_v41  }
  0xea   :  { %v1941_v44 = vpop.f32.mrf.mxu0  ;;  %v1943_v45 = vpop.f32.mrf.mxu1 }
  0xec   :  { %v1589_v46 = vpop.f32.mrf.mxu0  ;;  %v1669_v47 = vpop.f32.mrf.mxu1 }
  0xee   :  { %v1945_v48 = vpop.f32.mrf.mxu0  ;;  %v1947_v49 = vpop.f32.mrf.mxu1 }
  0xef   :  { %v1323_v50 = vpack.c.bf16 %v1945_v48, %v1941_v44  ;;  %v1423_v51 = vpack.c.bf16 %v1947_v49, %v1943_v45 }
  0xf0   :  { %v1590_v52 = vpop.f32.mrf.mxu0  ;;  %v1670_v53 = vpop.f32.mrf.mxu1 }
  0xf1   :  { %1440 = vst [vmem:[%s2356_s2 + $0x8] sm:$0xff] %v1323_v50   ;;  %1460 = vst [vmem:[%s2356_s2 + $0xa8] sm:$0xff] %v1423_v51  }
  0xf2   :  { %v1959_v54 = vpop.f32.mrf.mxu0  ;;  %v1961_v55 = vpop.f32.mrf.mxu1 }
  0xf4   :  { %v1593_v56 = vpop.f32.mrf.mxu0  ;;  %v1673_v57 = vpop.f32.mrf.mxu1 }
  0xf6   :  { %v1963_v58 = vpop.f32.mrf.mxu0  ;;  %v1965_v59 = vpop.f32.mrf.mxu1 }
  0xf7   :  { %v1328_v60 = vpack.c.bf16 %v1963_v58, %v1959_v54  ;;  %v1428_v61 = vpack.c.bf16 %v1965_v59, %v1961_v55 }
  0xf8   :  { %v1594_v62 = vpop.f32.mrf.mxu0  ;;  %v1674_v63 = vpop.f32.mrf.mxu1 }
  0xf9   :  { %1441 = vst [vmem:[%s2356_s2 + $0x10] sm:$0xff] %v1328_v60   ;;  %1461 = vst [vmem:[%s2356_s2 + $0xb0] sm:$0xff] %v1428_v61  }
  0xfa   :  { %v1977_v1 = vpop.f32.mrf.mxu0  ;;  %v1979_v2 = vpop.f32.mrf.mxu1 }
  0xfc   :  { %v1597_v3 = vpop.f32.mrf.mxu0  ;;  %v1677_v4 = vpop.f32.mrf.mxu1 }
  0xfe   :  { %v1981_v5 = vpop.f32.mrf.mxu0  ;;  %v1983_v6 = vpop.f32.mrf.mxu1 }
  0xff   :  { %v1333_v8 = vpack.c.bf16 %v1981_v5, %v1977_v1  ;;  %v1433_v9 = vpack.c.bf16 %v1983_v6, %v1979_v2 }
 0x100   :  { %v1598_v10 = vpop.f32.mrf.mxu0  ;;  %v1678_v11 = vpop.f32.mrf.mxu1 }
 0x101   :  { %1442 = vst [vmem:[%s2356_s2 + $0x18] sm:$0xff] %v1333_v8   ;;  %1462 = vst [vmem:[%s2356_s2 + $0xb8] sm:$0xff] %v1433_v9  }
 0x102   :  { %v1996_v12 = vpop.f32.mrf.mxu0  ;;  %v2016_v24 = vpop.f32.mrf.mxu1 }
 0x104   :  { %v1601_v13 = vpop.f32.mrf.mxu0  ;;  %v1681_v27 = vpop.f32.mrf.mxu1 }
 0x106   :  { %v1998_v14 = vpop.f32.mrf.mxu0  ;;  %v2025_v29 = vpop.f32.mrf.mxu1 }
 0x107   :  { %v1338_v15 = vpack.c.bf16 %v1998_v14, %v1996_v12  ;;  %v1438_v33 = vpack.c.bf16 %v2025_v29, %v2016_v24 }
 0x108   :  { %v1602_v16 = vpop.f32.mrf.mxu0  ;;  %v1682_v31 = vpop.f32.mrf.mxu1 }
 0x109   :  { %1443 = vst [vmem:[%s2356_s2 + $0x20] sm:$0xff] %v1338_v15   ;;  %1463 = vst [vmem:[%s2356_s2 + $0xc0] sm:$0xff] %v1438_v33  }
 0x10a   :  { %v2005_v17 = vpop.f32.mrf.mxu0 }
 0x10c   :  { %v1605_v18 = vpop.f32.mrf.mxu0 }
 0x10e   :  { %v2007_v19 = vpop.f32.mrf.mxu0 }
 0x10f   :  { %v1343_v20 = vpack.c.bf16 %v2007_v19, %v2005_v17 }
 0x110   :  { %v1606_v21 = vpop.f32.mrf.mxu0 }
 0x111   :  { %1444 = vst [vmem:[%s2356_s2 + $0x28] sm:$0xff] %v1343_v20  }
 0x112   :  { %v2014_v22 = vpop.f32.mrf.mxu0 }
 0x114   :  { %v1609_v23 = vpop.f32.mrf.mxu0 }
 0x116   :  { %v2018_v25 = vpop.f32.mrf.mxu0 }
 0x117   :  { %v1348_v26 = vpack.c.bf16 %v2018_v25, %v2014_v22 }
 0x118   :  { %v1610_v28 = vpop.f32.mrf.mxu0 }
 0x119   :  { %1445 = vst [vmem:[%s2356_s2 + $0x30] sm:$0xff] %v1348_v26  }
 0x11a   :  { %v2027_v30 = vpop.f32.mrf.mxu0 }
 0x11c   :  { %v1613_v32 = vpop.f32.mrf.mxu0 }
 0x11e   :  { %v2031_v36 = vpop.f32.mrf.mxu0 }
 0x11f   :  { %v1353_v37 = vpack.c.bf16 %v2031_v36, %v2027_v30 }
 0x120   :  { %v1614_v40 = vpop.f32.mrf.mxu0 }
 0x121   :  { %1446 = vst [vmem:[%s2356_s2 + $0x38] sm:$0xff] %v1353_v37  }
 0x122   :  { %v2041_v41 = vpop.f32.mrf.mxu0 }
 0x124   :  { %v1617_v42 = vpop.f32.mrf.mxu0 }
 0x126   :  { %v2043_v43 = vpop.f32.mrf.mxu0 }
 0x127   :  { %v1358_v46 = vpack.c.bf16 %v2043_v43, %v2041_v41 }
 0x128   :  { %v1618_v47 = vpop.f32.mrf.mxu0 }
 0x129   :  { %1447 = vst [vmem:[%s2356_s2 + $0x40] sm:$0xff] %v1358_v46  }
 0x12a   :  { %v2050_v50 = vpop.f32.mrf.mxu0 }
 0x12c   :  { %v1621_v51 = vpop.f32.mrf.mxu0 }
 0x12e   :  { %v2052_v52 = vpop.f32.mrf.mxu0 }
 0x12f   :  { %v1363_v53 = vpack.c.bf16 %v2052_v52, %v2050_v50 }
 0x130   :  { %v1622_v56 = vpop.f32.mrf.mxu0 }
 0x131   :  { %1448 = vst [vmem:[%s2356_s2 + $0x48] sm:$0xff] %v1363_v53  }
 0x132   :  { %v2059_v57 = vpop.f32.mrf.mxu0 }
 0x134   :  { %v1625_v60 = vpop.f32.mrf.mxu0 }
 0x136   :  { %v2061_v61 = vpop.f32.mrf.mxu0 }
 0x137   :  { %v1368_v62 = vpack.c.bf16 %v2061_v61, %v2059_v57 }
 0x138   :  { %v1626_v63 = vpop.f32.mrf.mxu0 }
 0x139   :  { %1449 = vst [vmem:[%s2356_s2 + $0x50] sm:$0xff] %v1368_v62  }
 0x13a   :  { %v2068_v3 = vpop.f32.mrf.mxu0 }
 0x13c   :  { %v1629_v4 = vpop.f32.mrf.mxu0 }
 0x13e   :  { %v2070_v8 = vpop.f32.mrf.mxu0 }
 0x13f   :  { %v1373_v9 = vpack.c.bf16 %v2070_v8, %v2068_v3 }
 0x140   :  { %v1630_v10 = vpop.f32.mrf.mxu0 }
 0x141   :  { %1450 = vst [vmem:[%s2356_s2 + $0x58] sm:$0xff] %v1373_v9  }
 0x142   :  { %v2077_v11 = vpop.f32.mrf.mxu0 }
 0x144   :  { %v1633_v13 = vpop.f32.mrf.mxu0 }
 0x146   :  { %v2079_v15 = vpop.f32.mrf.mxu0 }
 0x147   :  { %v1378_v16 = vpack.c.bf16 %v2079_v15, %v2077_v11 }
 0x148   :  { %v1634_v18 = vpop.f32.mrf.mxu0 }
 0x149   :  { %1451 = vst [vmem:[%s2356_s2 + $0x60] sm:$0xff] %v1378_v16  }
 0x14a   :  { %v2086_v20 = vpop.f32.mrf.mxu0 }
 0x14c   :  { %v1637_v21 = vpop.f32.mrf.mxu0 }
 0x14e   :  { %v2088_v23 = vpop.f32.mrf.mxu0 }
 0x14f   :  { %v1383_v26 = vpack.c.bf16 %v2088_v23, %v2086_v20 }
 0x150   :  { %v1638_v27 = vpop.f32.mrf.mxu0 }
 0x151   :  { %1452 = vst [vmem:[%s2356_s2 + $0x68] sm:$0xff] %v1383_v26  }
 0x152   :  { %v2095_v28 = vpop.f32.mrf.mxu0 }
 0x154   :  { %v1641_v31 = vpop.f32.mrf.mxu0 }
 0x156   :  { %v2097_v32 = vpop.f32.mrf.mxu0 }
 0x157   :  { %v1388_v33 = vpack.c.bf16 %v2097_v32, %v2095_v28 }
 0x158   :  { %v1642_v37 = vpop.f32.mrf.mxu0 }
 0x159   :  { %1453 = vst [vmem:[%s2356_s2 + $0x70] sm:$0xff] %v1388_v33  }
 0x15a   :  { %v2104_v40 = vpop.f32.mrf.mxu0 }
 0x15c   :  { %v1645_v42 = vpop.f32.mrf.mxu0 }
 0x15e   :  { %v2106_v46 = vpop.f32.mrf.mxu0 }
 0x15f   :  { %v1393_v47 = vpack.c.bf16 %v2106_v46, %v2104_v40  ;;  %1497 = vmatprep.subr.mxu1 %v2106_v46 }
 0x160   :  { %v1646_v51 = vpop.f32.mrf.mxu0  ;;  %1498 = vmatpush3.msra.mxu1 %v2031_v36 }
 0x161   :  { %1454 = vst [vmem:[%s2356_s2 + $0x78] sm:$0xff] %v1393_v47   ;;  %1499 = vmatprep.subr.mxu1 %v2104_v40 }
 0x162   :  { %1500 = vmatpush3.msra.mxu1 %v2027_v30  ;;  %v2117_v53 = vpop.f32.mrf.mxu0 }
 0x163   :  { %1501 = vmatprep.subr.mxu1 %v2097_v32 }
 0x164   :  { %1502 = vmatpush3.msra.mxu1 %v2018_v25  ;;  %v1649_v56 = vpop.f32.mrf.mxu0 }
 0x165   :  { %1503 = vmatprep.subr.mxu1 %v2095_v28  ;;  %v972_v56 = vmul.f32 %v2106_v46, %v2106_v46  ;;  %v970_v46 = vmul.f32 %v2097_v32, %v2097_v32  ;;  %v952_v32 = vmul.f32 %v2007_v19, %v2007_v19 }
 0x166   :  { %1504 = vmatpush3.msra.mxu1 %v2014_v22  ;;  %v2123_v60 = vpop.f32.mrf.mxu0 }
 0x167   :  { %1505 = vmatprep.subr.mxu1 %v2088_v23  ;;  %v1398_v62 = vpack.c.bf16 %v2123_v60, %v2117_v53 }
 0x168   :  { %1506 = vmatpush3.msra.mxu1 %v2007_v19  ;;  %v1650_v63 = vpop.f32.mrf.mxu0  ;;  %v965_v19 = vmul.f32 %v2077_v11, %v2077_v11 }
 0x169   :  { %1507 = vmatprep.subr.mxu1 %v2086_v20  ;;  %1455 = vst [vmem:[%s2356_s2 + $0x80] sm:$0xff] %v1398_v62   ;;  %v956_v62 = vmul.f32 %v2031_v36, %v2031_v36  ;;  %v971_v63 = vmul.f32 %v2104_v40, %v2104_v40  ;;  %v954_v36 = vmul.f32 %v2018_v25, %v2018_v25 }
 0x16a   :  { %1508 = vmatpush3.msra.mxu1 %v2005_v17  ;;  %v2134_v4 = vpop.f32.mrf.mxu0  ;;  %v969_v40 = vmul.f32 %v2095_v28, %v2095_v28  ;;  %v967_v25 = vmul.f32 %v2086_v20, %v2086_v20  ;;  %v951_v28 = vmul.f32 %v2005_v17, %v2005_v17  ;;  %v949_v20 = vmul.f32 %v1996_v12, %v1996_v12 }
 0x16b   :  { %1509 = vmatprep.subr.mxu1 %v2079_v15  ;;  %v964_v17 = vmul.f32 %v2070_v8, %v2070_v8 }
 0x16c   :  { %1510 = vmatpush3.msra.mxu1 %v1998_v14  ;;  %v1653_v9 = vpop.f32.mrf.mxu0 }
 0x16d   :  { %1511 = vmatprep.subr.mxu1 %v2077_v11  ;;  %v955_v9 = vmul.f32 %v2027_v30, %v2027_v30  ;;  %v968_v30 = vmul.f32 %v2088_v23, %v2088_v23  ;;  %v950_v23 = vmul.f32 %v1998_v14, %v1998_v14  ;;  %v963_v14 = vmul.f32 %v2068_v3, %v2068_v3 }
 0x16e   :  { %1512 = vmatpush3.msra.mxu1 %v1996_v12  ;;  %v2140_v10 = vpop.f32.mrf.mxu0  ;;  %v947_v11 = vmul.f32 %v1977_v1, %v1977_v1  ;;  %v962_v12 = vmul.f32 %v2061_v61, %v2061_v61 }
 0x16f   :  { %1513 = vmatprep.subr.mxu1 %v2070_v8  ;;  %v1403_v13 = vpack.c.bf16 %v2140_v10, %v2134_v4  ;;  %v946_v8 = vmul.f32 %v1963_v58, %v1963_v58 }
 0x170   :  { %1514 = vmatpush3.msra.mxu1 %v1981_v5  ;;  %v1654_v16 = vpop.f32.mrf.mxu0 }
 0x171   :  { %1515 = vmatprep.subr.mxu1 %v2068_v3  ;;  %1456 = vst [vmem:[%s2356_s2 + $0x88] sm:$0xff] %v1403_v13   ;;  %v953_v13 = vmul.f32 %v2014_v22, %v2014_v22  ;;  %v966_v22 = vmul.f32 %v2079_v15, %v2079_v15  ;;  %v948_v15 = vmul.f32 %v1981_v5, %v1981_v5 }
 0x172   :  { %1516 = vmatpush3.msra.mxu1 %v1977_v1  ;;  %v2151_v18 = vpop.f32.mrf.mxu0  ;;  %v961_v5 = vmul.f32 %v2059_v57, %v2059_v57  ;;  %v945_v3 = vmul.f32 %v1959_v54, %v1959_v54  ;;  %v960_v1 = vmul.f32 %v2052_v52, %v2052_v52  ;;  %v975_v16 = vmul.f32 %v2134_v4, %v2134_v4 }
 0x173   :  { %1517 = vmatprep.subr.mxu1 %v2061_v61  ;;  %v944_v61 = vmul.f32 %v1945_v48, %v1945_v48 }
 0x174   :  { %1518 = vmatpush3.msra.mxu1 %v1963_v58  ;;  %v1657_v21 = vpop.f32.mrf.mxu0  ;;  %v959_v58 = vmul.f32 %v2050_v50, %v2050_v50 }
 0x175   :  { %1519 = vmatprep.subr.mxu1 %v2059_v57  ;;  %v943_v57 = vmul.f32 %v1941_v44, %v1941_v44  ;;  %v974_v21 = vmul.f32 %v2123_v60, %v2123_v60 }
 0x176   :  { %1520 = vmatpush3.msra.mxu1 %v1959_v54  ;;  %v2157_v26 = vpop.f32.mrf.mxu0  ;;  %v958_v54 = vmul.f32 %v2043_v43, %v2043_v43 }
 0x177   :  { %1521 = vmatprep.subr.mxu1 %v2052_v52  ;;  %v1408_v27 = vpack.c.bf16 %v2157_v26, %v2151_v18  ;;  %v942_v52 = vmul.f32 %v1927_v38, %v1927_v38 }
 0x178   :  { %1522 = vmatpush3.msra.mxu1 %v1945_v48  ;;  %v1658_v31 = vpop.f32.mrf.mxu0  ;;  %v957_v48 = vmul.f32 %v2041_v41, %v2041_v41 }
 0x179   :  { %1523 = vmatprep.subr.mxu1 %v2050_v50  ;;  %1457 = vst [vmem:[%s2356_s2 + $0x90] sm:$0xff] %v1408_v27   ;;  %v941_v50 = vmul.f32 %v1923_v34, %v1923_v34 }
 0x17a   :  { %1524 = vmatpush3.msra.mxu1 %v1941_v44  ;;  %v2168_v33 = vpop.f32.mrf.mxu0  ;;  %v988_v44 = vmul.f32 %v1983_v6, %v1983_v6 }
 0x17b   :  { %1525 = vmatprep.subr.mxu1 %v2043_v43  ;;  %v976_v43 = vmul.f32 %v2140_v10, %v2140_v10 }
 0x17c   :  { %1526 = vmatpush3.msra.mxu1 %v1927_v38  ;;  %v1661_v37 = vpop.f32.mrf.mxu0  ;;  %v987_v38 = vmul.f32 %v1979_v2, %v1979_v2 }
 0x17d   :  { %1527 = vmatprep.subr.mxu1 %v2041_v41  ;;  %v983_v41 = vmul.f32 %v1943_v45, %v1943_v45 }
 0x17e   :  { %1528 = vmatpush3.msra.mxu1 %v1923_v34  ;;  %v2174_v42 = vpop.f32.mrf.mxu0  ;;  %v986_v34 = vmul.f32 %v1965_v59, %v1965_v59 }
 0x17f   :  { %871 = vmatprep.subr.mxu1 %v1735_v0  ;;  %866 = vmatmul.mubr.f32.vlgmr.msra.gmra.mxu1 %v1737_v7  ;;  %v1413_v47 = vpack.c.bf16 %v2174_v42, %v2168_v33 }
 0x180   :  { %872 = vmatpush1.msra.mxu1 %v1983_v6  ;;  %v1662_v51 = vpop.f32.mrf.mxu0  ;;  %1263 = vmatprep.mubr.msk.f32.mxu1 %vm797_vm1, %v1737_v7  ;;  %v985_v6 = vmul.f32 %v1961_v55, %v1961_v55 }
 0x181   :  { %873 = vmatprep.subr.mxu1 %v1735_v0  ;;  %1458 = vst [vmem:[%s2356_s2 + $0x98] sm:$0xff] %v1413_v47  }
 0x182   :  { %874 = vmatpush1.msra.mxu1 %v1979_v2  ;;  %v984_v2 = vmul.f32 %v1947_v49, %v1947_v49 }
 0x183   :  { %875 = vmatprep.subr.mxu1 %v1735_v0 }
 0x184   :  { %876 = vmatpush1.msra.mxu1 %v1965_v59  ;;  %v982_v59 = vmul.f32 %v1929_v39, %v1929_v39 }
 0x185   :  { %877 = vmatprep.subr.mxu1 %v1735_v0 }
 0x186   :  { %878 = vmatpush1.msra.mxu1 %v1961_v55  ;;  %v981_v55 = vmul.f32 %v1925_v35, %v1925_v35 }
 0x187   :  { %879 = vmatprep.subr.mxu1 %v1735_v0 }
 0x188   :  { %880 = vmatpush1.msra.mxu1 %v1947_v49  ;;  %v980_v49 = vmul.f32 %v2174_v42, %v2174_v42 }
 0x189   :  { %881 = vmatprep.subr.mxu1 %v1735_v0 }
 0x18a   :  { %882 = vmatpush1.msra.mxu1 %v1943_v45  ;;  %v979_v45 = vmul.f32 %v2168_v33, %v2168_v33 }
 0x18b   :  { %883 = vmatprep.subr.mxu1 %v1735_v0 }
 0x18c   :  { %884 = vmatpush1.msra.mxu1 %v1929_v39  ;;  %v978_v39 = vmul.f32 %v2157_v26, %v2157_v26 }
 0x18d   :  { %885 = vmatprep.subr.mxu1 %v1735_v0 }
 0x18e   :  { %886 = vmatpush1.msra.mxu1 %v1925_v35  ;;  %v977_v35 = vmul.f32 %v2151_v18, %v2151_v18 }
 0x18f   :  { %887 = vmatprep.subr.mxu1 %v1735_v0 }
 0x190   :  { %888 = vmatpush1.msra.mxu1 %v2174_v42 }
 0x191   :  { %889 = vmatprep.subr.mxu1 %v1735_v0 }
 0x192   :  { %890 = vmatpush1.msra.mxu1 %v2168_v33 }
 0x193   :  { %891 = vmatprep.subr.mxu1 %v1735_v0 }
 0x194   :  { %892 = vmatpush1.msra.mxu1 %v2157_v26 }
 0x195   :  { %893 = vmatprep.subr.mxu1 %v1735_v0 }
 0x196   :  { %894 = vmatpush1.msra.mxu1 %v2151_v18  ;;  %v973_v18 = vmul.f32 %v2117_v53, %v2117_v53 }
 0x197   :  { %895 = vmatprep.subr.mxu1 %v1735_v0 }
 0x198   :  { %896 = vmatpush1.msra.mxu1 %v2140_v10  ;;  %v990_v10 = vmul.f32 %v2025_v29, %v2025_v29 }
 0x199   :  { %897 = vmatprep.subr.mxu1 %v1735_v0 }
 0x19a   :  { %898 = vmatpush1.msra.mxu1 %v2134_v4  ;;  %v989_v4 = vmul.f32 %v2016_v24, %v2016_v24 }
 0x19b   :  { %899 = vmatprep.subr.mxu1 %v1735_v0 }
 0x19c   :  { %900 = vmatpush1.msra.mxu1 %v2123_v60 }
 0x19d   :  { %901 = vmatprep.subr.mxu1 %v1735_v0 }
 0x19e   :  { %902 = vmatpush1.msra.mxu1 %v2117_v53 }
 0x19f   :  { %931 = vmatprep.subr.mxu1 %v1735_v0 }
 0x1a0   :  { %932 = vmatpush2.msra.mxu1 %v2025_v29 }
 0x1a1   :  { %933 = vmatprep.subr.mxu1 %v1735_v0 }
 0x1a2   :  { %934 = vmatpush2.msra.mxu1 %v2016_v24 }
 0x1a3   :  { %936 = vmatmul.mubr.f32.vlgmr.msra.gmra.mxu1 %v1737_v7  ;;  %1532 = vmatprep.subr.mxu1 %v972_v56 }
 0x1a4   :  { %1533 = vmatpush3.msra.mxu1 %v956_v62  ;;  %1055 = vmatprep.mubr.f32.mxu1 %v1737_v7 }
 0x1a5   :  { %1534 = vmatprep.subr.mxu1 %v971_v63 }
 0x1a6   :  { %1535 = vmatpush3.msra.mxu1 %v955_v9 }
 0x1a7   :  { %1536 = vmatprep.subr.mxu1 %v970_v46 }
 0x1a8   :  { %1537 = vmatpush3.msra.mxu1 %v954_v36 }
 0x1a9   :  { %1538 = vmatprep.subr.mxu1 %v969_v40 }
 0x1aa   :  { %1539 = vmatpush3.msra.mxu1 %v953_v13 }
 0x1ab   :  { %1540 = vmatprep.subr.mxu1 %v968_v30 }
 0x1ac   :  { %1541 = vmatpush3.msra.mxu1 %v952_v32 }
 0x1ad   :  { %1542 = vmatprep.subr.mxu1 %v967_v25 }
 0x1ae   :  { %1543 = vmatpush3.msra.mxu1 %v951_v28 }
 0x1af   :  { %1544 = vmatprep.subr.mxu1 %v966_v22 }
 0x1b0   :  { %1545 = vmatpush3.msra.mxu1 %v950_v23 }
 0x1b1   :  { %1546 = vmatprep.subr.mxu1 %v965_v19 }
 0x1b2   :  { %1547 = vmatpush3.msra.mxu1 %v949_v20 }
 0x1b3   :  { %1548 = vmatprep.subr.mxu1 %v964_v17 }
 0x1b4   :  { %1549 = vmatpush3.msra.mxu1 %v948_v15 }
 0x1b5   :  { %1550 = vmatprep.subr.mxu1 %v963_v14 }
 0x1b6   :  { %1551 = vmatpush3.msra.mxu1 %v947_v11 }
 0x1b7   :  { %1552 = vmatprep.subr.mxu1 %v962_v12 }
 0x1b8   :  { %1553 = vmatpush3.msra.mxu1 %v946_v8 }
 0x1b9   :  { %1554 = vmatprep.subr.mxu1 %v961_v5 }
 0x1ba   :  { %1555 = vmatpush3.msra.mxu1 %v945_v3 }
 0x1bb   :  { %1556 = vmatprep.subr.mxu1 %v960_v1 }
 0x1bc   :  { %1557 = vmatpush3.msra.mxu1 %v944_v61 }
 0x1bd   :  { %1558 = vmatprep.subr.mxu1 %v959_v58 }
 0x1be   :  { %1559 = vmatpush3.msra.mxu1 %v943_v57 }
 0x1bf   :  { %1560 = vmatprep.subr.mxu1 %v958_v54 }
 0x1c0   :  { %1561 = vmatpush3.msra.mxu1 %v942_v52 }
 0x1c1   :  { %1562 = vmatprep.subr.mxu1 %v957_v48 }
 0x1c2   :  { %1563 = vmatpush3.msra.mxu1 %v941_v50 }
 0x1c3   :  { %1061 = vmatprep.subr.mxu1 %v1735_v0  ;;  %1056 = vmatmul.mubr.f32.vlgmr.msra.gmra.mxu1 %v1737_v7 }
 0x1c4   :  { %1062 = vmatpush1.msra.mxu1 %v988_v44  ;;  %1264 = vmatprep.mubr.msk.f32.mxu1 %vm797_vm1, %v1737_v7 }
 0x1c5   :  { %1063 = vmatprep.subr.mxu1 %v1735_v0 }
 0x1c6   :  { %1064 = vmatpush1.msra.mxu1 %v987_v38 }
 0x1c7   :  { %1065 = vmatprep.subr.mxu1 %v1735_v0 }
 0x1c8   :  { %1066 = vmatpush1.msra.mxu1 %v986_v34 }
 0x1c9   :  { %1067 = vmatprep.subr.mxu1 %v1735_v0 }
 0x1ca   :  { %1068 = vmatpush1.msra.mxu1 %v985_v6 }
 0x1cb   :  { %1069 = vmatprep.subr.mxu1 %v1735_v0 }
 0x1cc   :  { %1070 = vmatpush1.msra.mxu1 %v984_v2 }
 0x1cd   :  { %1071 = vmatprep.subr.mxu1 %v1735_v0 }
 0x1ce   :  { %1072 = vmatpush1.msra.mxu1 %v983_v41 }
 0x1cf   :  { %1073 = vmatprep.subr.mxu1 %v1735_v0 }
 0x1d0   :  { %1074 = vmatpush1.msra.mxu1 %v982_v59 }
 0x1d1   :  { %1075 = vmatprep.subr.mxu1 %v1735_v0 }
 0x1d2   :  { %1076 = vmatpush1.msra.mxu1 %v981_v55 }
 0x1d3   :  { %1077 = vmatprep.subr.mxu1 %v1735_v0 }
 0x1d4   :  { %1078 = vmatpush1.msra.mxu1 %v980_v49 }
 0x1d5   :  { %1079 = vmatprep.subr.mxu1 %v1735_v0 }
 0x1d6   :  { %1080 = vmatpush1.msra.mxu1 %v979_v45 }
 0x1d7   :  { %1081 = vmatprep.subr.mxu1 %v1735_v0 }
 0x1d8   :  { %1082 = vmatpush1.msra.mxu1 %v978_v39 }
 0x1d9   :  { %1083 = vmatprep.subr.mxu1 %v1735_v0 }
 0x1da   :  { %1084 = vmatpush1.msra.mxu1 %v977_v35 }
 0x1db   :  { %1085 = vmatprep.subr.mxu1 %v1735_v0 }
 0x1dc   :  { %1086 = vmatpush1.msra.mxu1 %v976_v43 }
 0x1dd   :  { %1087 = vmatprep.subr.mxu1 %v1735_v0 }
 0x1de   :  { %1088 = vmatpush1.msra.mxu1 %v975_v16 }
 0x1df   :  { %1089 = vmatprep.subr.mxu1 %v1735_v0 }
 0x1e0   :  { %1090 = vmatpush1.msra.mxu1 %v974_v21 }
 0x1e1   :  { %1091 = vmatprep.subr.mxu1 %v1735_v0 }
 0x1e2   :  { %1092 = vmatpush1.msra.mxu1 %v973_v18 }
 0x1e3   :  { %1121 = vmatprep.subr.mxu1 %v1735_v0 }
 0x1e4   :  { %1122 = vmatpush2.msra.mxu1 %v990_v10 }
 0x1e5   :  { %1123 = vmatprep.subr.mxu1 %v1735_v0 }
 0x1e6   :  { %1124 = vmatpush2.msra.mxu1 %v989_v4 }
 0x1e7   :  { %1126 = vmatmul.mubr.f32.vlgmr.msra.gmra.mxu1 %v1737_v7  ;;  %v1136_v7 = vld [vmem:[%s2357_s3] sm:$0x3] }
 0x23f   :  { %v1529_v53 = vpop.f32.mrf.mxu1 }
 0x241   :  { %v1530_v60 = vpop.f32.mrf.mxu1 }
 0x242   :  { %v1531_v29 = vadd.f32 %v1530_v60, %v1529_v53 }
 0x263   :  { %v937_v26 = vpop.f32.mrf.mxu1 }
 0x264   :  { %v938_v27 = vadd.f32 %v1531_v29, %v937_v26 }
 0x265   :  { %v939_v31 = vpop.f32.mrf.mxu1 }
 0x283   :  { %v1564_v33 = vpop.f32.mrf.mxu1 }
 0x285   :  { %v1565_v37 = vpop.f32.mrf.mxu1 }
 0x286   :  { %v1566_v24 = vadd.f32 %v1565_v37, %v1564_v33 }
 0x2a7   :  { %v1127_v42 = vpop.f32.mrf.mxu1 }
 0x2a8   :  { %v1128_v47 = vadd.f32 %v1566_v24, %v1127_v42 }
 0x2a9   :  { %v1129_v51 = vpop.f32.mrf.mxu1 }
 0x2aa   :  { %v1138_v56 = vrot.slane %v1128_v47, 7 }
 0x2ac   :  { %v1141_v62 = vsel %vm1140_vm2, %v938_v27, %v1138_v56 }
 0x2ad   :  { %v1142_v0 = vadd.f32 %v1141_v62, %v1136_v7 }
 0x2af   :  { %1143 = vst [vmem:[%s2357_s3] sm:$0x3] %v1142_v0 }

</bundles_post_ra>
